<compile_context>
chip_gen: v5e
topology: v5e:2x2
jax: 0.10.0
libtpu: 0.0.40
codegen_flags: <defaults>
</compile_context>

<pallas_src>
import functools
import math

import jax
import jax.numpy as jnp
from jax.experimental import pallas as pl
from jax.experimental.pallas import tpu as pltpu

LN_EPS = 1e-5          # PyTorch nn.LayerNorm default
_NEG = -1e30           # "minus infinity" additive bias for disallowed attention slots
_R_MAX = 512           # target packed rows (BN * T) per grid step
                       # (review: 512-1024 good for v5e/v6e VMEM; keep moderate for v7x)


def _layer_norm(x, gamma, beta):
    mu = jnp.mean(x, axis=-1, keepdims=True)
    var = jnp.mean(jnp.square(x - mu), axis=-1, keepdims=True)
    return (x - mu) * jax.lax.rsqrt(var + LN_EPS) * gamma + beta


def _encoder_layer_kernel(src_ref, bias_ref, kpm_ref, wqkv_ref, wo_ref,
                          w1_ref, w2_ref, vec_ref, out_ref, attn_ref, *, nhead):
    """One grid step: BN batch elements (batch-leading), fully fused encoder layer."""
    BN, T, D = src_ref.shape
    F = w1_ref.shape[1]
    HD = D // nhead
    R = BN * T
    cdt = wqkv_ref.dtype                 # matmul-operand dtype (bf16 by default)

    # ---- packed 1-D parameters: one (8, W) f32 VMEM tile ----
    b_qkv = vec_ref[0:1, :3 * D]
    b_ff1 = vec_ref[1:2, :F]
    b_out = vec_ref[2:3, :D]
    b_ff2 = vec_ref[3:4, :D]
    g1, be1 = vec_ref[4:5, :D], vec_ref[5:6, :D]
    g2, be2 = vec_ref[6:7, :D], vec_ref[7:8, :D]

    # Batch-leading rows (row = b * T + t) -> (R, D) packed matrix for row-wise work.
    x = src_ref[...].astype(jnp.float32).reshape(R, D)

    # ---- pre-norm 1 + fused QKV projection (softmax scale folded into Q) ----
    xn = _layer_norm(x, g1, be1)
    qkv = jnp.dot(xn.astype(cdt), wqkv_ref[...],
                  preferred_element_type=jnp.float32) + b_qkv        # (R, 3D)
    qkv3 = qkv.reshape(BN, T, 3 * D)

    # ---- per-batch-element attention, masks folded as plain additive biases ----
    bias = bias_ref[...]                                             # (T, T)
    kpm = kpm_ref[...]                                               # (BN, 1, T)
    for h in range(nhead):                                           # static unroll
        qh = qkv3[:, :, h * HD:(h + 1) * HD].astype(cdt)             # (BN, T, HD)
        kh = qkv3[:, :, D + h * HD:D + (h + 1) * HD].astype(cdt)
        vh = qkv3[:, :, 2 * D + h * HD:2 * D + (h + 1) * HD].astype(cdt)
        s = jnp.einsum("bqd,bkd->bqk", qh, kh,
                       preferred_element_type=jnp.float32)           # (BN, T, T)
        s = s + bias + kpm
        s = s - jnp.max(s, axis=-1, keepdims=True)
        p = jnp.exp(s)
        p = p * pl.reciprocal(jnp.sum(p, axis=-1, keepdims=True), approx=True)
        oh = jnp.einsum("bqk,bkd->bqd", p.astype(cdt), vh,
                        preferred_element_type=jnp.float32)          # (BN, T, HD)
        attn_ref[:, :, h * HD:(h + 1) * HD] = oh                     # lane-slice write

    # ---- single W_o projection over all heads (full contraction depth D) ----
    attn = attn_ref[...].reshape(R, D)
    x = x + jnp.dot(attn.astype(cdt), wo_ref[...],
                    preferred_element_type=jnp.float32) + b_out      # residual

    # ---- pre-norm 2 + feed forward ----
    yn = _layer_norm(x, g2, be2)
    hid = jnp.maximum(
        jnp.dot(yn.astype(cdt), w1_ref[...],
                preferred_element_type=jnp.float32) + b_ff1, 0.0)
    y = x + jnp.dot(hid.astype(cdt), w2_ref[...],
                    preferred_element_type=jnp.float32) + b_ff2

    out_ref[...] = y.reshape(BN, T, D).astype(out_ref.dtype)


def _choose_grid(T, N):
    """Batch elements per grid step: cap packed rows at _R_MAX and guarantee >= 2
    grid steps whenever N >= 2 (so both v7x TensorCores get work)."""
    bn = max(1, min(N, _R_MAX // max(T, 1)))
    if N >= 2:
        bn = max(1, min(bn, pl.cdiv(N, 2)))
    return bn, pl.cdiv(N, bn)


def transformer_encoder_layer(src, params, nhead, src_mask=None,
                              src_key_padding_mask=None,
                              param_dtype=jnp.bfloat16):
    """Pre-norm TransformerEncoderLayer forward.  src: (T, N, d_model) -> same shape."""
    T, N, D = src.shape
    F = params["w1"].shape[1]
    assert D % nhead == 0
    HD = D // nhead

    # ---- parameter prep (pure JAX; cache in real use) ----
    scale = 1.0 / math.sqrt(HD)
    wqkv = jnp.concatenate([params["wq"] * scale, params["wk"], params["wv"]],
                           axis=1).astype(param_dtype)                          # (D, 3D)
    wo = params["wo"].astype(param_dtype)
    w1 = params["w1"].astype(param_dtype)
    w2 = params["w2"].astype(param_dtype)
    b_qkv = jnp.concatenate([params["bq"].reshape(-1) * scale,
                             params["bk"].reshape(-1), params["bv"].reshape(-1)])
    W = max(3 * D, F)

    def _row(v):
        v = v.reshape(1, -1).astype(jnp.float32)
        return jnp.pad(v, ((0, 0), (0, W - v.shape[1])))

    vecs = jnp.concatenate(
        [_row(b_qkv), _row(params["b1"]), _row(params["bo"]), _row(params["b2"]),
         _row(params["g1"]), _row(params["be1"]),
         _row(params["g2"]), _row(params["be2"])], axis=0)                      # (8, W)

    # ---- tiny additive masks (wrapper-built, folded in-kernel) ----
    if src_mask is None:
        attn_bias = jnp.zeros((T, T), jnp.float32)
    elif src_mask.dtype == jnp.bool_:
        attn_bias = jnp.where(src_mask, _NEG, 0.0).astype(jnp.float32)
    else:
        attn_bias = src_mask.astype(jnp.float32)
    if src_key_padding_mask is None:
        kpm = jnp.zeros((N, 1, T), jnp.float32)
    elif src_key_padding_mask.dtype == jnp.bool_:
        kpm = jnp.where(src_key_padding_mask, _NEG, 0.0).astype(jnp.float32)[:, None, :]
    else:
        kpm = src_key_padding_mask.astype(jnp.float32)[:, None, :]

    # ---- batch-leading layout + zero-padding of the batch tail (no garbage rows) ----
    BN, G = _choose_grid(T, N)
    Np = BN * G
    src_b = jnp.swapaxes(src, 0, 1)                                             # (N, T, D)
    if Np != N:
        src_b = jnp.pad(src_b, ((0, Np - N), (0, 0), (0, 0)))
        kpm = jnp.pad(kpm, ((0, Np - N), (0, 0), (0, 0)))

    # ---- scheduling hints: cost estimate + VMEM budget ----
    Rt = Np * T
    itemsz = jnp.dtype(src.dtype).itemsize
    psz = jnp.dtype(param_dtype).itemsize
    flops = int(2 * Rt * D * 3 * D            # QKV
                + 4 * Np * T * T * D          # QK^T + PV over all heads
                + 2 * Rt * D * D              # W_o
                + 4 * Rt * D * F)             # FFN
    transc = int(nhead * Np * T * T + 2 * Rt + nhead * Np * T)
    bytes_acc = int(2 * Rt * D * itemsz
                    + (wqkv.size + wo.size + w1.size + w2.size) * psz
                    + vecs.size * 4 + (T * T + Np * T) * 4)
    blk = BN * T * D
    vmem_need = (4 * blk * itemsz                              # src/out blocks x2 buf
                 + 2 * (T * T + BN * T) * 4                    # masks x2 buf
                 + 2 * (3 * D * D + D * D + 2 * D * F) * psz   # weights x2 buf
                 + 2 * 8 * W * 4
                 + blk * 4                                     # head-output scratch
                 + (7 * blk + 2 * BN * T * T + BN * T * F) * 4)  # f32 intermediates
    vmem_limit = int(min(max(vmem_need * 2, 32 * 1024 * 1024), 64 * 1024 * 1024))

    def _full(arr):
        # TODO(synk): pipeline_mode=pl.Buffered(1) here would halve weight VMEM on v7x.
        return pl.BlockSpec(arr.shape, lambda g, _n=arr.ndim: (0,) * _n)

    out = pl.pallas_call(
        functools.partial(_encoder_layer_kernel, nhead=nhead),
        out_shape=jax.ShapeDtypeStruct((Np, T, D), src.dtype),
        grid=(G,),
        in_specs=[pl.BlockSpec((BN, T, D), lambda g: (g, 0, 0)),
                  pl.BlockSpec((T, T), lambda g: (0, 0)),
                  pl.BlockSpec((BN, 1, T), lambda g: (g, 0, 0)),
                  _full(wqkv), _full(wo), _full(w1), _full(w2), _full(vecs)],
        out_specs=pl.BlockSpec((BN, T, D), lambda g: (g, 0, 0)),
        scratch_shapes=[pltpu.VMEM((BN, T, D), jnp.float32)],
        compiler_params=pltpu.CompilerParams(
            dimension_semantics=("parallel",),
            vmem_limit_bytes=vmem_limit),
        cost_estimate=pl.CostEstimate(flops=flops, transcendentals=transc,
                                      bytes_accessed=bytes_acc),
    )(src_b, attn_bias, kpm, wqkv, wo, w1, w2, vecs)

    out = out[:N] if Np != N else out
    return jnp.swapaxes(out, 0, 1)


def reference_encoder_layer(src, params, nhead,
                            src_mask=None, src_key_padding_mask=None):
    """Pure-JAX f32 reference, (T, N, D)."""
    T, N, D = src.shape
    HD = D // nhead
    xn = _layer_norm(src, params["g1"], params["be1"])
    q = xn @ params["wq"] + params["bq"]
    k = xn @ params["wk"] + params["bk"]
    v = xn @ params["wv"] + params["bv"]
    qh = q.reshape(T, N, nhead, HD)
    kh = k.reshape(T, N, nhead, HD)
    vh = v.reshape(T, N, nhead, HD)
    s = jnp.einsum("tnhd,snhd->nhts", qh, kh) / math.sqrt(HD)
    if src_mask is not None:
        add = (jnp.where(src_mask, _NEG, 0.0)
               if src_mask.dtype == jnp.bool_ else src_mask.astype(jnp.float32))
        s = s + add[None, None, :, :]
    if src_key_padding_mask is not None:
        s = jnp.where(src_key_padding_mask[:, None, None, :], _NEG, s)
    p = jax.nn.softmax(s, axis=-1)
    o = jnp.einsum("nhts,snhd->tnhd", p, vh).reshape(T, N, D)
    x = src + o @ params["wo"] + params["bo"]
    yn = _layer_norm(x, params["g2"], params["be2"])
    ffn = jnp.maximum(yn @ params["w1"] + params["b1"], 0.0) @ params["w2"] + params["b2"]
    return x + ffn


if __name__ == "__main__":
    T, N = 8, 2
    D_MODEL, NHEAD, DIM_FF = 32, 4, 64

    key = jax.random.PRNGKey(0)
    ks = jax.random.split(key, 12)

    def nrm(k, shape, s=0.05):
        return jax.random.normal(k, shape, jnp.float32) * s

    params = {
        # projections stored (in, out): kernel / reference compute x @ W + b
        "wq": nrm(ks[0], (D_MODEL, D_MODEL)), "bq": nrm(ks[1], (D_MODEL,)),
        "wk": nrm(ks[2], (D_MODEL, D_MODEL)), "bk": nrm(ks[3], (D_MODEL,)),
        "wv": nrm(ks[4], (D_MODEL, D_MODEL)), "bv": nrm(ks[5], (D_MODEL,)),
        "wo": nrm(ks[6], (D_MODEL, D_MODEL)), "bo": nrm(ks[7], (D_MODEL,)),
        "g1": jnp.ones((D_MODEL,), jnp.float32),
        "be1": jnp.zeros((D_MODEL,), jnp.float32),
        "g2": jnp.ones((D_MODEL,), jnp.float32),
        "be2": jnp.zeros((D_MODEL,), jnp.float32),
        "w1": nrm(ks[8], (D_MODEL, DIM_FF)), "b1": nrm(ks[9], (DIM_FF,)),
        "w2": nrm(ks[10], (DIM_FF, D_MODEL)), "b2": nrm(ks[11], (D_MODEL,)),
    }
    src = jax.random.normal(jax.random.PRNGKey(1), (T, N, D_MODEL), jnp.float32)

    fwd = jax.jit(functools.partial(transformer_encoder_layer, nhead=NHEAD))
    ref = functools.partial(reference_encoder_layer, nhead=NHEAD)

    # tolerance 2e-2: bf16 matmul operands + approx softmax reciprocal vs f32 reference
    # 1) no masks
    out1 = jax.block_until_ready(fwd(src, params))
    ref1 = ref(src, params)
    assert out1.shape == (T, N, D_MODEL)
    assert jnp.allclose(out1, ref1, rtol=2e-2, atol=2e-2), "mismatch (no masks)"

    # 2) causal src_mask + key padding mask
    causal = jnp.triu(jnp.ones((T, T), dtype=bool), k=1)          # True = not allowed
    kpm = jnp.zeros((N, T), dtype=bool).at[1, T - 2:].set(True)   # pad tail of element 1
    out2 = jax.block_until_ready(
        fwd(src, params, src_mask=causal, src_key_padding_mask=kpm))
    ref2 = ref(src, params, src_mask=causal, src_key_padding_mask=kpm)
    assert jnp.allclose(out2, ref2, rtol=2e-2, atol=2e-2), "mismatch (masked)"

    print("KERNEL_OK")
</pallas_src>

<mosaic_0001>
module attributes {stable_mosaic.version = 11 : i64} {
  func.func @_encoder_layer_kernel(%arg0: i32, %arg1: memref<1x8x32xf32, #tpu.memory_space<vmem>>, %arg2: memref<8x8xf32, #tpu.memory_space<vmem>>, %arg3: memref<1x1x8xf32, #tpu.memory_space<vmem>>, %arg4: memref<32x96xbf16, #tpu.memory_space<vmem>>, %arg5: memref<32x32xbf16, #tpu.memory_space<vmem>>, %arg6: memref<32x64xbf16, #tpu.memory_space<vmem>>, %arg7: memref<64x32xbf16, #tpu.memory_space<vmem>>, %arg8: memref<8x96xf32, #tpu.memory_space<vmem>>, %arg9: memref<1x8x32xf32, #tpu.memory_space<vmem>>, %arg10: memref<1x8x32xf32, #tpu.memory_space<vmem>>) attributes {dimension_semantics = [#tpu.dimension_semantics<parallel>], iteration_bounds = array<i64: 2>, scalar_prefetch = 0 : i64, scratch_operands = 1 : i64, tpu.core_type = #tpu.core_type<tc>, window_params = [{transform_indices = @transform_0, window_bounds = array<i64: 1, 8, 32>}, {pipeline_mode = #tpu.pipeline_mode<synchronous>, transform_indices = @transform_1, window_bounds = array<i64: 8, 8>}, {transform_indices = @transform_2, window_bounds = array<i64: 1, 1, 8>}, {pipeline_mode = #tpu.pipeline_mode<synchronous>, transform_indices = @transform_3, window_bounds = array<i64: 32, 96>}, {pipeline_mode = #tpu.pipeline_mode<synchronous>, transform_indices = @transform_4, window_bounds = array<i64: 32, 32>}, {pipeline_mode = #tpu.pipeline_mode<synchronous>, transform_indices = @transform_5, window_bounds = array<i64: 32, 64>}, {pipeline_mode = #tpu.pipeline_mode<synchronous>, transform_indices = @transform_6, window_bounds = array<i64: 64, 32>}, {pipeline_mode = #tpu.pipeline_mode<synchronous>, transform_indices = @transform_7, window_bounds = array<i64: 8, 96>}, {transform_indices = @transform_8, window_bounds = array<i64: 1, 8, 32>}]} {
    %c0 = arith.constant 0 : index
    %c0_0 = arith.constant 0 : index
    %0 = vector.load %arg8[%c0, %c0_0] : memref<8x96xf32, #tpu.memory_space<vmem>>, vector<1x96xf32>
    %c1 = arith.constant 1 : index
    %c0_1 = arith.constant 0 : index
    %1 = vector.load %arg8[%c1, %c0_1] : memref<8x96xf32, #tpu.memory_space<vmem>>, vector<1x64xf32>
    %c2 = arith.constant 2 : index
    %c0_2 = arith.constant 0 : index
    %2 = vector.load %arg8[%c2, %c0_2] : memref<8x96xf32, #tpu.memory_space<vmem>>, vector<1x32xf32>
    %c3 = arith.constant 3 : index
    %c0_3 = arith.constant 0 : index
    %3 = vector.load %arg8[%c3, %c0_3] : memref<8x96xf32, #tpu.memory_space<vmem>>, vector<1x32xf32>
    %c4 = arith.constant 4 : index
    %c0_4 = arith.constant 0 : index
    %4 = vector.load %arg8[%c4, %c0_4] : memref<8x96xf32, #tpu.memory_space<vmem>>, vector<1x32xf32>
    %c5 = arith.constant 5 : index
    %c0_5 = arith.constant 0 : index
    %5 = vector.load %arg8[%c5, %c0_5] : memref<8x96xf32, #tpu.memory_space<vmem>>, vector<1x32xf32>
    %c6 = arith.constant 6 : index
    %c0_6 = arith.constant 0 : index
    %6 = vector.load %arg8[%c6, %c0_6] : memref<8x96xf32, #tpu.memory_space<vmem>>, vector<1x32xf32>
    %c7 = arith.constant 7 : index
    %c0_7 = arith.constant 0 : index
    %7 = vector.load %arg8[%c7, %c0_7] : memref<8x96xf32, #tpu.memory_space<vmem>>, vector<1x32xf32>
    %c0_8 = arith.constant 0 : index
    %c0_9 = arith.constant 0 : index
    %c0_10 = arith.constant 0 : index
    %8 = vector.load %arg1[%c0_8, %c0_9, %c0_10] : memref<1x8x32xf32, #tpu.memory_space<vmem>>, vector<1x8x32xf32>
    %9 = vector.shape_cast %8 : vector<1x8x32xf32> to vector<8x32xf32>
    %cst = arith.constant dense<0.000000e+00> : vector<8xf32>
    %10 = vector.multi_reduction <add>, %9, %cst [1] : vector<8x32xf32> to vector<8xf32>
    %11 = vector.shape_cast %10 : vector<8xf32> to vector<8x1xf32>
    %cst_11 = arith.constant 3.200000e+01 : f32
    %12 = vector.broadcast %cst_11 : f32 to vector<8x1xf32>
    %13 = arith.divf %11, %12 : vector<8x1xf32>
    %14 = vector.broadcast %13 : vector<8x1xf32> to vector<8x32xf32>
    %15 = arith.subf %9, %14 : vector<8x32xf32>
    %16 = arith.mulf %15, %15 : vector<8x32xf32>
    %cst_12 = arith.constant dense<0.000000e+00> : vector<8xf32>
    %17 = vector.multi_reduction <add>, %16, %cst_12 [1] : vector<8x32xf32> to vector<8xf32>
    %18 = vector.shape_cast %17 : vector<8xf32> to vector<8x1xf32>
    %cst_13 = arith.constant 3.200000e+01 : f32
    %19 = vector.broadcast %cst_13 : f32 to vector<8x1xf32>
    %20 = arith.divf %18, %19 : vector<8x1xf32>
    %21 = vector.broadcast %13 : vector<8x1xf32> to vector<8x32xf32>
    %22 = arith.subf %9, %21 : vector<8x32xf32>
    %cst_14 = arith.constant 9.99999974E-6 : f32
    %23 = vector.broadcast %cst_14 : f32 to vector<8x1xf32>
    %24 = arith.addf %20, %23 : vector<8x1xf32>
    %25 = math.rsqrt %24 : vector<8x1xf32>
    %26 = vector.broadcast %25 : vector<8x1xf32> to vector<8x32xf32>
    %27 = arith.mulf %22, %26 : vector<8x32xf32>
    %28 = vector.broadcast %4 : vector<1x32xf32> to vector<8x32xf32>
    %29 = arith.mulf %27, %28 : vector<8x32xf32>
    %30 = vector.broadcast %5 : vector<1x32xf32> to vector<8x32xf32>
    %31 = arith.addf %29, %30 : vector<8x32xf32>
    %32 = arith.truncf %31 : vector<8x32xf32> to vector<8x32xbf16>
    %c0_15 = arith.constant 0 : index
    %c0_16 = arith.constant 0 : index
    %33 = vector.load %arg4[%c0_15, %c0_16] : memref<32x96xbf16, #tpu.memory_space<vmem>>, vector<32x96xbf16>
    %cst_17 = arith.constant dense<0.000000e+00> : vector<8x96xf32>
    %34 = tpu.matmul %32, %33, %cst_17 {dimension_numbers = #tpu.dot_dimension_numbers<[1], [0], [0], [1], [0, 0, 1, 1], [], []>} : vector<8x32xbf16>, vector<32x96xbf16>, vector<8x96xf32> -> vector<8x96xf32>
    %35 = vector.broadcast %0 : vector<1x96xf32> to vector<8x96xf32>
    %36 = arith.addf %34, %35 : vector<8x96xf32>
    %37 = vector.shape_cast %36 : vector<8x96xf32> to vector<1x8x96xf32>
    %c0_18 = arith.constant 0 : index
    %c0_19 = arith.constant 0 : index
    %38 = vector.load %arg2[%c0_18, %c0_19] : memref<8x8xf32, #tpu.memory_space<vmem>>, vector<8x8xf32>
    %c0_20 = arith.constant 0 : index
    %c0_21 = arith.constant 0 : index
    %c0_22 = arith.constant 0 : index
    %39 = vector.load %arg3[%c0_20, %c0_21, %c0_22] : memref<1x1x8xf32, #tpu.memory_space<vmem>>, vector<1x1x8xf32>
    %40 = vector.extract_strided_slice %37 {offsets = [0, 0, 0], sizes = [1, 8, 8], strides = [1, 1, 1]} : vector<1x8x96xf32> to vector<1x8x8xf32>
    %41 = arith.truncf %40 : vector<1x8x8xf32> to vector<1x8x8xbf16>
    %42 = vector.extract_strided_slice %37 {offsets = [0, 0, 32], sizes = [1, 8, 8], strides = [1, 1, 1]} : vector<1x8x96xf32> to vector<1x8x8xf32>
    %43 = arith.truncf %42 : vector<1x8x8xf32> to vector<1x8x8xbf16>
    %44 = vector.extract_strided_slice %37 {offsets = [0, 0, 64], sizes = [1, 8, 8], strides = [1, 1, 1]} : vector<1x8x96xf32> to vector<1x8x8xf32>
    %45 = arith.truncf %44 : vector<1x8x8xf32> to vector<1x8x8xbf16>
    "tpu.trace_start"() <{level = 10 : i32, message = "bqd,bkd->bqk"}> : () -> ()
    %cst_23 = arith.constant dense<0.000000e+00> : vector<1x8x8xf32>
    %46 = tpu.matmul %41, %43, %cst_23 {dimension_numbers = #tpu.dot_dimension_numbers<[2], [2], [1], [1], [0, 0, 0, 1, 1, 1], [0], [0]>} : vector<1x8x8xbf16>, vector<1x8x8xbf16>, vector<1x8x8xf32> -> vector<1x8x8xf32>
    "tpu.trace_stop"() : () -> ()
    %47 = vector.shape_cast %38 : vector<8x8xf32> to vector<1x8x8xf32>
    %48 = arith.addf %46, %47 : vector<1x8x8xf32>
    %49 = vector.broadcast %39 : vector<1x1x8xf32> to vector<1x8x8xf32>
    %50 = arith.addf %48, %49 : vector<1x8x8xf32>
    %cst_24 = arith.constant dense<0xFF800000> : vector<1x8xf32>
    %51 = vector.multi_reduction <maximumf>, %50, %cst_24 [2] : vector<1x8x8xf32> to vector<1x8xf32>
    %52 = vector.shape_cast %51 : vector<1x8xf32> to vector<1x8x1xf32>
    %53 = vector.broadcast %52 : vector<1x8x1xf32> to vector<1x8x8xf32>
    %54 = arith.subf %50, %53 : vector<1x8x8xf32>
    %55 = math.exp %54 : vector<1x8x8xf32>
    %cst_25 = arith.constant dense<0.000000e+00> : vector<1x8xf32>
    %56 = vector.multi_reduction <add>, %55, %cst_25 [2] : vector<1x8x8xf32> to vector<1x8xf32>
    %57 = vector.shape_cast %56 : vector<1x8xf32> to vector<1x8x1xf32>
    %58 = tpu.reciprocal %57 {approx = true} : vector<1x8x1xf32> -> vector<1x8x1xf32>
    %59 = vector.broadcast %58 : vector<1x8x1xf32> to vector<1x8x8xf32>
    %60 = arith.mulf %55, %59 : vector<1x8x8xf32>
    %61 = arith.truncf %60 : vector<1x8x8xf32> to vector<1x8x8xbf16>
    "tpu.trace_start"() <{level = 10 : i32, message = "bqk,bkd->bqd"}> : () -> ()
    %cst_26 = arith.constant dense<0.000000e+00> : vector<1x8x8xf32>
    %62 = tpu.matmul %61, %45, %cst_26 {dimension_numbers = #tpu.dot_dimension_numbers<[2], [1], [1], [2], [0, 0, 0, 1, 1, 2], [0], [0]>} : vector<1x8x8xbf16>, vector<1x8x8xbf16>, vector<1x8x8xf32> -> vector<1x8x8xf32>
    "tpu.trace_stop"() : () -> ()
    %c0_27 = arith.constant 0 : index
    %c0_28 = arith.constant 0 : index
    %c0_29 = arith.constant 0 : index
    %63 = vector.load %arg10[%c0_27, %c0_28, %c0_29] : memref<1x8x32xf32, #tpu.memory_space<vmem>>, vector<1x8x8xf32>
    tpu.vector_store %arg10[%c0_27, %c0_28, %c0_29], %62 {strides = array<i32>} : memref<1x8x32xf32, #tpu.memory_space<vmem>>, vector<1x8x8xf32>,
    %64 = vector.extract_strided_slice %37 {offsets = [0, 0, 8], sizes = [1, 8, 8], strides = [1, 1, 1]} : vector<1x8x96xf32> to vector<1x8x8xf32>
    %65 = arith.truncf %64 : vector<1x8x8xf32> to vector<1x8x8xbf16>
    %66 = vector.extract_strided_slice %37 {offsets = [0, 0, 40], sizes = [1, 8, 8], strides = [1, 1, 1]} : vector<1x8x96xf32> to vector<1x8x8xf32>
    %67 = arith.truncf %66 : vector<1x8x8xf32> to vector<1x8x8xbf16>
    %68 = vector.extract_strided_slice %37 {offsets = [0, 0, 72], sizes = [1, 8, 8], strides = [1, 1, 1]} : vector<1x8x96xf32> to vector<1x8x8xf32>
    %69 = arith.truncf %68 : vector<1x8x8xf32> to vector<1x8x8xbf16>
    "tpu.trace_start"() <{level = 10 : i32, message = "bqd,bkd->bqk"}> : () -> ()
    %cst_30 = arith.constant dense<0.000000e+00> : vector<1x8x8xf32>
    %70 = tpu.matmul %65, %67, %cst_30 {dimension_numbers = #tpu.dot_dimension_numbers<[2], [2], [1], [1], [0, 0, 0, 1, 1, 1], [0], [0]>} : vector<1x8x8xbf16>, vector<1x8x8xbf16>, vector<1x8x8xf32> -> vector<1x8x8xf32>
    "tpu.trace_stop"() : () -> ()
    %71 = vector.shape_cast %38 : vector<8x8xf32> to vector<1x8x8xf32>
    %72 = arith.addf %70, %71 : vector<1x8x8xf32>
    %73 = vector.broadcast %39 : vector<1x1x8xf32> to vector<1x8x8xf32>
    %74 = arith.addf %72, %73 : vector<1x8x8xf32>
    %cst_31 = arith.constant dense<0xFF800000> : vector<1x8xf32>
    %75 = vector.multi_reduction <maximumf>, %74, %cst_31 [2] : vector<1x8x8xf32> to vector<1x8xf32>
    %76 = vector.shape_cast %75 : vector<1x8xf32> to vector<1x8x1xf32>
    %77 = vector.broadcast %76 : vector<1x8x1xf32> to vector<1x8x8xf32>
    %78 = arith.subf %74, %77 : vector<1x8x8xf32>
    %79 = math.exp %78 : vector<1x8x8xf32>
    %cst_32 = arith.constant dense<0.000000e+00> : vector<1x8xf32>
    %80 = vector.multi_reduction <add>, %79, %cst_32 [2] : vector<1x8x8xf32> to vector<1x8xf32>
    %81 = vector.shape_cast %80 : vector<1x8xf32> to vector<1x8x1xf32>
    %82 = tpu.reciprocal %81 {approx = true} : vector<1x8x1xf32> -> vector<1x8x1xf32>
    %83 = vector.broadcast %82 : vector<1x8x1xf32> to vector<1x8x8xf32>
    %84 = arith.mulf %79, %83 : vector<1x8x8xf32>
    %85 = arith.truncf %84 : vector<1x8x8xf32> to vector<1x8x8xbf16>
    "tpu.trace_start"() <{level = 10 : i32, message = "bqk,bkd->bqd"}> : () -> ()
    %cst_33 = arith.constant dense<0.000000e+00> : vector<1x8x8xf32>
    %86 = tpu.matmul %85, %69, %cst_33 {dimension_numbers = #tpu.dot_dimension_numbers<[2], [1], [1], [2], [0, 0, 0, 1, 1, 2], [0], [0]>} : vector<1x8x8xbf16>, vector<1x8x8xbf16>, vector<1x8x8xf32> -> vector<1x8x8xf32>
    "tpu.trace_stop"() : () -> ()
    %c0_34 = arith.constant 0 : index
    %c0_35 = arith.constant 0 : index
    %c8 = arith.constant 8 : index
    %87 = vector.load %arg10[%c0_34, %c0_35, %c8] : memref<1x8x32xf32, #tpu.memory_space<vmem>>, vector<1x8x8xf32>
    tpu.vector_store %arg10[%c0_34, %c0_35, %c8], %86 {strides = array<i32>} : memref<1x8x32xf32, #tpu.memory_space<vmem>>, vector<1x8x8xf32>,
    %88 = vector.extract_strided_slice %37 {offsets = [0, 0, 16], sizes = [1, 8, 8], strides = [1, 1, 1]} : vector<1x8x96xf32> to vector<1x8x8xf32>
    %89 = arith.truncf %88 : vector<1x8x8xf32> to vector<1x8x8xbf16>
    %90 = vector.extract_strided_slice %37 {offsets = [0, 0, 48], sizes = [1, 8, 8], strides = [1, 1, 1]} : vector<1x8x96xf32> to vector<1x8x8xf32>
    %91 = arith.truncf %90 : vector<1x8x8xf32> to vector<1x8x8xbf16>
    %92 = vector.extract_strided_slice %37 {offsets = [0, 0, 80], sizes = [1, 8, 8], strides = [1, 1, 1]} : vector<1x8x96xf32> to vector<1x8x8xf32>
    %93 = arith.truncf %92 : vector<1x8x8xf32> to vector<1x8x8xbf16>
    "tpu.trace_start"() <{level = 10 : i32, message = "bqd,bkd->bqk"}> : () -> ()
    %cst_36 = arith.constant dense<0.000000e+00> : vector<1x8x8xf32>
    %94 = tpu.matmul %89, %91, %cst_36 {dimension_numbers = #tpu.dot_dimension_numbers<[2], [2], [1], [1], [0, 0, 0, 1, 1, 1], [0], [0]>} : vector<1x8x8xbf16>, vector<1x8x8xbf16>, vector<1x8x8xf32> -> vector<1x8x8xf32>
    "tpu.trace_stop"() : () -> ()
    %95 = vector.shape_cast %38 : vector<8x8xf32> to vector<1x8x8xf32>
    %96 = arith.addf %94, %95 : vector<1x8x8xf32>
    %97 = vector.broadcast %39 : vector<1x1x8xf32> to vector<1x8x8xf32>
    %98 = arith.addf %96, %97 : vector<1x8x8xf32>
    %cst_37 = arith.constant dense<0xFF800000> : vector<1x8xf32>
    %99 = vector.multi_reduction <maximumf>, %98, %cst_37 [2] : vector<1x8x8xf32> to vector<1x8xf32>
    %100 = vector.shape_cast %99 : vector<1x8xf32> to vector<1x8x1xf32>
    %101 = vector.broadcast %100 : vector<1x8x1xf32> to vector<1x8x8xf32>
    %102 = arith.subf %98, %101 : vector<1x8x8xf32>
    %103 = math.exp %102 : vector<1x8x8xf32>
    %cst_38 = arith.constant dense<0.000000e+00> : vector<1x8xf32>
    %104 = vector.multi_reduction <add>, %103, %cst_38 [2] : vector<1x8x8xf32> to vector<1x8xf32>
    %105 = vector.shape_cast %104 : vector<1x8xf32> to vector<1x8x1xf32>
    %106 = tpu.reciprocal %105 {approx = true} : vector<1x8x1xf32> -> vector<1x8x1xf32>
    %107 = vector.broadcast %106 : vector<1x8x1xf32> to vector<1x8x8xf32>
    %108 = arith.mulf %103, %107 : vector<1x8x8xf32>
    %109 = arith.truncf %108 : vector<1x8x8xf32> to vector<1x8x8xbf16>
    "tpu.trace_start"() <{level = 10 : i32, message = "bqk,bkd->bqd"}> : () -> ()
    %cst_39 = arith.constant dense<0.000000e+00> : vector<1x8x8xf32>
    %110 = tpu.matmul %109, %93, %cst_39 {dimension_numbers = #tpu.dot_dimension_numbers<[2], [1], [1], [2], [0, 0, 0, 1, 1, 2], [0], [0]>} : vector<1x8x8xbf16>, vector<1x8x8xbf16>, vector<1x8x8xf32> -> vector<1x8x8xf32>
    "tpu.trace_stop"() : () -> ()
    %c0_40 = arith.constant 0 : index
    %c0_41 = arith.constant 0 : index
    %c16 = arith.constant 16 : index
    %111 = vector.load %arg10[%c0_40, %c0_41, %c16] : memref<1x8x32xf32, #tpu.memory_space<vmem>>, vector<1x8x8xf32>
    tpu.vector_store %arg10[%c0_40, %c0_41, %c16], %110 {strides = array<i32>} : memref<1x8x32xf32, #tpu.memory_space<vmem>>, vector<1x8x8xf32>,
    %112 = vector.extract_strided_slice %37 {offsets = [0, 0, 24], sizes = [1, 8, 8], strides = [1, 1, 1]} : vector<1x8x96xf32> to vector<1x8x8xf32>
    %113 = arith.truncf %112 : vector<1x8x8xf32> to vector<1x8x8xbf16>
    %114 = vector.extract_strided_slice %37 {offsets = [0, 0, 56], sizes = [1, 8, 8], strides = [1, 1, 1]} : vector<1x8x96xf32> to vector<1x8x8xf32>
    %115 = arith.truncf %114 : vector<1x8x8xf32> to vector<1x8x8xbf16>
    %116 = vector.extract_strided_slice %37 {offsets = [0, 0, 88], sizes = [1, 8, 8], strides = [1, 1, 1]} : vector<1x8x96xf32> to vector<1x8x8xf32>
    %117 = arith.truncf %116 : vector<1x8x8xf32> to vector<1x8x8xbf16>
    "tpu.trace_start"() <{level = 10 : i32, message = "bqd,bkd->bqk"}> : () -> ()
    %cst_42 = arith.constant dense<0.000000e+00> : vector<1x8x8xf32>
    %118 = tpu.matmul %113, %115, %cst_42 {dimension_numbers = #tpu.dot_dimension_numbers<[2], [2], [1], [1], [0, 0, 0, 1, 1, 1], [0], [0]>} : vector<1x8x8xbf16>, vector<1x8x8xbf16>, vector<1x8x8xf32> -> vector<1x8x8xf32>
    "tpu.trace_stop"() : () -> ()
    %119 = vector.shape_cast %38 : vector<8x8xf32> to vector<1x8x8xf32>
    %120 = arith.addf %118, %119 : vector<1x8x8xf32>
    %121 = vector.broadcast %39 : vector<1x1x8xf32> to vector<1x8x8xf32>
    %122 = arith.addf %120, %121 : vector<1x8x8xf32>
    %cst_43 = arith.constant dense<0xFF800000> : vector<1x8xf32>
    %123 = vector.multi_reduction <maximumf>, %122, %cst_43 [2] : vector<1x8x8xf32> to vector<1x8xf32>
    %124 = vector.shape_cast %123 : vector<1x8xf32> to vector<1x8x1xf32>
    %125 = vector.broadcast %124 : vector<1x8x1xf32> to vector<1x8x8xf32>
    %126 = arith.subf %122, %125 : vector<1x8x8xf32>
    %127 = math.exp %126 : vector<1x8x8xf32>
    %cst_44 = arith.constant dense<0.000000e+00> : vector<1x8xf32>
    %128 = vector.multi_reduction <add>, %127, %cst_44 [2] : vector<1x8x8xf32> to vector<1x8xf32>
    %129 = vector.shape_cast %128 : vector<1x8xf32> to vector<1x8x1xf32>
    %130 = tpu.reciprocal %129 {approx = true} : vector<1x8x1xf32> -> vector<1x8x1xf32>
    %131 = vector.broadcast %130 : vector<1x8x1xf32> to vector<1x8x8xf32>
    %132 = arith.mulf %127, %131 : vector<1x8x8xf32>
    %133 = arith.truncf %132 : vector<1x8x8xf32> to vector<1x8x8xbf16>
    "tpu.trace_start"() <{level = 10 : i32, message = "bqk,bkd->bqd"}> : () -> ()
    %cst_45 = arith.constant dense<0.000000e+00> : vector<1x8x8xf32>
    %134 = tpu.matmul %133, %117, %cst_45 {dimension_numbers = #tpu.dot_dimension_numbers<[2], [1], [1], [2], [0, 0, 0, 1, 1, 2], [0], [0]>} : vector<1x8x8xbf16>, vector<1x8x8xbf16>, vector<1x8x8xf32> -> vector<1x8x8xf32>
    "tpu.trace_stop"() : () -> ()
    %c0_46 = arith.constant 0 : index
    %c0_47 = arith.constant 0 : index
    %c24 = arith.constant 24 : index
    %135 = vector.load %arg10[%c0_46, %c0_47, %c24] : memref<1x8x32xf32, #tpu.memory_space<vmem>>, vector<1x8x8xf32>
    tpu.vector_store %arg10[%c0_46, %c0_47, %c24], %134 {strides = array<i32>} : memref<1x8x32xf32, #tpu.memory_space<vmem>>, vector<1x8x8xf32>,
    %c0_48 = arith.constant 0 : index
    %c0_49 = arith.constant 0 : index
    %c0_50 = arith.constant 0 : index
    %136 = vector.load %arg10[%c0_48, %c0_49, %c0_50] : memref<1x8x32xf32, #tpu.memory_space<vmem>>, vector<1x8x32xf32>
    %137 = vector.shape_cast %136 : vector<1x8x32xf32> to vector<8x32xf32>
    %138 = arith.truncf %137 : vector<8x32xf32> to vector<8x32xbf16>
    %c0_51 = arith.constant 0 : index
    %c0_52 = arith.constant 0 : index
    %139 = vector.load %arg5[%c0_51, %c0_52] : memref<32x32xbf16, #tpu.memory_space<vmem>>, vector<32x32xbf16>
    %cst_53 = arith.constant dense<0.000000e+00> : vector<8x32xf32>
    %140 = tpu.matmul %138, %139, %cst_53 {dimension_numbers = #tpu.dot_dimension_numbers<[1], [0], [0], [1], [0, 0, 1, 1], [], []>} : vector<8x32xbf16>, vector<32x32xbf16>, vector<8x32xf32> -> vector<8x32xf32>
    %141 = arith.addf %9, %140 : vector<8x32xf32>
    %142 = vector.broadcast %2 : vector<1x32xf32> to vector<8x32xf32>
    %143 = arith.addf %141, %142 : vector<8x32xf32>
    %cst_54 = arith.constant dense<0.000000e+00> : vector<8xf32>
    %144 = vector.multi_reduction <add>, %143, %cst_54 [1] : vector<8x32xf32> to vector<8xf32>
    %145 = vector.shape_cast %144 : vector<8xf32> to vector<8x1xf32>
    %cst_55 = arith.constant 3.200000e+01 : f32
    %146 = vector.broadcast %cst_55 : f32 to vector<8x1xf32>
    %147 = arith.divf %145, %146 : vector<8x1xf32>
    %148 = vector.broadcast %147 : vector<8x1xf32> to vector<8x32xf32>
    %149 = arith.subf %143, %148 : vector<8x32xf32>
    %150 = arith.mulf %149, %149 : vector<8x32xf32>
    %cst_56 = arith.constant dense<0.000000e+00> : vector<8xf32>
    %151 = vector.multi_reduction <add>, %150, %cst_56 [1] : vector<8x32xf32> to vector<8xf32>
    %152 = vector.shape_cast %151 : vector<8xf32> to vector<8x1xf32>
    %cst_57 = arith.constant 3.200000e+01 : f32
    %153 = vector.broadcast %cst_57 : f32 to vector<8x1xf32>
    %154 = arith.divf %152, %153 : vector<8x1xf32>
    %155 = vector.broadcast %147 : vector<8x1xf32> to vector<8x32xf32>
    %156 = arith.subf %143, %155 : vector<8x32xf32>
    %cst_58 = arith.constant 9.99999974E-6 : f32
    %157 = vector.broadcast %cst_58 : f32 to vector<8x1xf32>
    %158 = arith.addf %154, %157 : vector<8x1xf32>
    %159 = math.rsqrt %158 : vector<8x1xf32>
    %160 = vector.broadcast %159 : vector<8x1xf32> to vector<8x32xf32>
    %161 = arith.mulf %156, %160 : vector<8x32xf32>
    %162 = vector.broadcast %6 : vector<1x32xf32> to vector<8x32xf32>
    %163 = arith.mulf %161, %162 : vector<8x32xf32>
    %164 = vector.broadcast %7 : vector<1x32xf32> to vector<8x32xf32>
    %165 = arith.addf %163, %164 : vector<8x32xf32>
    %166 = arith.truncf %165 : vector<8x32xf32> to vector<8x32xbf16>
    %c0_59 = arith.constant 0 : index
    %c0_60 = arith.constant 0 : index
    %167 = vector.load %arg6[%c0_59, %c0_60] : memref<32x64xbf16, #tpu.memory_space<vmem>>, vector<32x64xbf16>
    %cst_61 = arith.constant dense<0.000000e+00> : vector<8x64xf32>
    %168 = tpu.matmul %166, %167, %cst_61 {dimension_numbers = #tpu.dot_dimension_numbers<[1], [0], [0], [1], [0, 0, 1, 1], [], []>} : vector<8x32xbf16>, vector<32x64xbf16>, vector<8x64xf32> -> vector<8x64xf32>
    %169 = vector.broadcast %1 : vector<1x64xf32> to vector<8x64xf32>
    %170 = arith.addf %168, %169 : vector<8x64xf32>
    %cst_62 = arith.constant 0.000000e+00 : f32
    %171 = vector.broadcast %cst_62 : f32 to vector<8x64xf32>
    %172 = arith.maximumf %170, %171 : vector<8x64xf32>
    %173 = arith.truncf %172 : vector<8x64xf32> to vector<8x64xbf16>
    %c0_63 = arith.constant 0 : index
    %c0_64 = arith.constant 0 : index
    %174 = vector.load %arg7[%c0_63, %c0_64] : memref<64x32xbf16, #tpu.memory_space<vmem>>, vector<64x32xbf16>
    %cst_65 = arith.constant dense<0.000000e+00> : vector<8x32xf32>
    %175 = tpu.matmul %173, %174, %cst_65 {dimension_numbers = #tpu.dot_dimension_numbers<[1], [0], [0], [1], [0, 0, 1, 1], [], []>} : vector<8x64xbf16>, vector<64x32xbf16>, vector<8x32xf32> -> vector<8x32xf32>
    %176 = arith.addf %143, %175 : vector<8x32xf32>
    %177 = vector.broadcast %3 : vector<1x32xf32> to vector<8x32xf32>
    %178 = arith.addf %176, %177 : vector<8x32xf32>
    %179 = vector.shape_cast %178 : vector<8x32xf32> to vector<1x8x32xf32>
    %c0_66 = arith.constant 0 : index
    %c0_67 = arith.constant 0 : index
    %c0_68 = arith.constant 0 : index
    %180 = vector.load %arg9[%c0_66, %c0_67, %c0_68] : memref<1x8x32xf32, #tpu.memory_space<vmem>>, vector<1x8x32xf32>
    tpu.vector_store %arg9[%c0_66, %c0_67, %c0_68], %179 {strides = array<i32>} : memref<1x8x32xf32, #tpu.memory_space<vmem>>, vector<1x8x32xf32>,
    return
  }
  func.func @transform_0(%arg0: i32) -> (i32, i32, i32) {
    %c0_i32 = arith.constant 0 : i32
    %c0_i32_0 = arith.constant 0 : i32
    %c0_i32_1 = arith.constant 0 : i32
    return %arg0, %c0_i32, %c0_i32_0 : i32, i32, i32
  }
  func.func @transform_1(%arg0: i32) -> (i32, i32) {
    %c0_i32 = arith.constant 0 : i32
    %c0_i32_0 = arith.constant 0 : i32
    %c0_i32_1 = arith.constant 0 : i32
    return %c0_i32, %c0_i32_0 : i32, i32
  }
  func.func @transform_2(%arg0: i32) -> (i32, i32, i32) {
    %c0_i32 = arith.constant 0 : i32
    %c0_i32_0 = arith.constant 0 : i32
    %c0_i32_1 = arith.constant 0 : i32
    return %arg0, %c0_i32, %c0_i32_0 : i32, i32, i32
  }
  func.func @transform_3(%arg0: i32) -> (i32, i32) {
    %c0_i32 = arith.constant 0 : i32
    %c0_i32_0 = arith.constant 0 : i32
    %c0_i32_1 = arith.constant 0 : i32
    return %c0_i32, %c0_i32_0 : i32, i32
  }
  func.func @transform_4(%arg0: i32) -> (i32, i32) {
    %c0_i32 = arith.constant 0 : i32
    %c0_i32_0 = arith.constant 0 : i32
    %c0_i32_1 = arith.constant 0 : i32
    return %c0_i32, %c0_i32_0 : i32, i32
  }
  func.func @transform_5(%arg0: i32) -> (i32, i32) {
    %c0_i32 = arith.constant 0 : i32
    %c0_i32_0 = arith.constant 0 : i32
    %c0_i32_1 = arith.constant 0 : i32
    return %c0_i32, %c0_i32_0 : i32, i32
  }
  func.func @transform_6(%arg0: i32) -> (i32, i32) {
    %c0_i32 = arith.constant 0 : i32
    %c0_i32_0 = arith.constant 0 : i32
    %c0_i32_1 = arith.constant 0 : i32
    return %c0_i32, %c0_i32_0 : i32, i32
  }
  func.func @transform_7(%arg0: i32) -> (i32, i32) {
    %c0_i32 = arith.constant 0 : i32
    %c0_i32_0 = arith.constant 0 : i32
    %c0_i32_1 = arith.constant 0 : i32
    return %c0_i32, %c0_i32_0 : i32, i32
  }
  func.func @transform_8(%arg0: i32) -> (i32, i32, i32) {
    %c0_i32 = arith.constant 0 : i32
    %c0_i32_0 = arith.constant 0 : i32
    %c0_i32_1 = arith.constant 0 : i32
    return %arg0, %c0_i32, %c0_i32_0 : i32, i32, i32
  }
}

</mosaic_0001>

<bundles_post_ra>
// kernel: transformer_encoder_layer.1
= control target key start
LH: loop header
LB: loop body
LE: loop exit
PB: predicated region body
PF: predicated region fallthrough
CT: control target
= control target key end

     0   :  { %s1056_s27 = smov 0   ;;  %s1203_s0 = inlined_call_operand.vmem [shape: f32[2,8,32], index: 0, kind: input, shape index: {}]   ;;  %s1204_s1 = inlined_call_operand.vmem [shape: f32[8,8], index: 1, kind: input, shape index: {}]   ;;  %s1205_s2 = inlined_call_operand.vmem [shape: f32[2,1,8], index: 2, kind: input, shape index: {}]   ;;  %s1206_s3 = inlined_call_operand.vmem [shape: bf16[32,96], index: 3, kind: input, shape index: {}]   ;;  %s1207_s4 = inlined_call_operand.vmem [shape: bf16[32,32], index: 4, kind: input, shape index: {}]   ;;  %s1208_s5 = inlined_call_operand.vmem [shape: bf16[32,64], index: 5, kind: input, shape index: {}]   ;;  %s1209_s6 = inlined_call_operand.vmem [shape: bf16[64,32], index: 6, kind: input, shape index: {}]   ;;  %s1210_s7 = inlined_call_operand.vmem [shape: f32[8,96], index: 7, kind: input, shape index: {}]   ;;  %s1211_s8 = inlined_call_operand.vmem [shape: f32[2,8,32], index: 8, kind: output, shape index: {}]  }
   0x1 LB: > { %s863_s28 = sadd.s32 4294967295, %s994_s27   ;;  %p867_p0 = scmp.ge.s32.totalorder %s994_s27, 1  ;;  %s994_s27 = sphi %s1056_s27, %s18_s27  }
   0x2   : > { %p269_p1 = scmp.lt.s32.totalorder %s994_s27, 3 }
   0x4   : > { %p270_p2 = pnand %p867_p0, %p269_p1 }
   0x5   : > { %p304_p3 = scmp.lt.s32.totalorder (!%p270_p2), %s863_s28, 1  ;;  %s997_s24 = smov (!%p270_p2), 104  }
   0x6   : > { %273 = sbr.rel (%p270_p2) target bundleno = 1890 (0x762), region = 52  ;;  %s998_s25 = smov (!%p270_p2), 120  }
   0x7   : > { %s999_s26 = smov (!%p270_p2), 96   ;;  %s1000_s30 = smov (!%p270_p2), 72  }
   0x8   : > { %s1001_s9 = smov (!%p270_p2), 88   ;;  %s1002_s11 = smov (!%p270_p2), 112  }
   0x9   : > { %s1003_s12 = smov (!%p270_p2), 80   ;;  %s1005_s17 = smov (!%p270_p2), 56  }
   0xa   : > { %s1006_s18 = smov (!%p270_p2), 40   ;;  %s1007_s19 = smov (!%p270_p2), 48  }
   0xb   : > { %s1213_s28 = smov (!%p304_p3, %s863_s28), 1  ;;  %vm325_vm0 = vcmask 261120   ;;  %v996_v2 = vmov 32.0   ;;  %v925_v14 = vld [vmem:[%s1206_s3 + $0x8] sm:$0xff]  ;;  %v924_v15 = vld [vmem:[%s1206_s3] sm:$0xff]  ;;  %vm401_vm5 = vcmask 64512  }
   0xc   : > { %s868_s29 = sshll.u32 %s1213_s28, 3  ;;  %s310_s10 = scalar_lea.vmem %s1205_s2, %s1213_s28  ;;  %966 = vrcp.f32 %v996_v2  ;;  %386 = vmatpush.bf16.msra.mxu0 %v925_v14  ;;  %v958_v25 = vld [vmem:[%s1210_s7 + $0x4] ss:$0 sm:$0xff]  ;;  %v959_v28 = vld [vmem:[%s1210_s7 + $0x5] ss:$0 sm:$0xff]  ;;  %vm442_vm6 = vcmask 1043456  }
   0xd   : > { %s307_s13 = scalar_lea.vmem %s1203_s0, %s868_s29  ;;  %v960_v32 = vld [vmem:[%s1210_s7] ss:$0 sm:$0xff]  ;;  %s1008_s20 = smov 8   ;;  %vm521_vm7 = vcmask 130112   ;;  %vm584_vm8 = vcmask 195712   ;;  %vm647_vm9 = vcmask 261312  }
   0xe   : > { %v1076_v0 = vld [vmem:[%s307_s13] sm:$0xff]  ;;  %s1009_s21 = smov 24   ;;  %s1010_s22 = smov 16   ;;  %vm780_vm13 = vcmask 523264  }
   0xf   : > { %v326_v1 = vsel %vm325_vm0, %v1076_v0, 0.0  ;;  %v393_v50 = vld [vmem:[%s1204_s1] sm:$0xff]  ;;  %s314_s14 = scalar_lea.vmem %s1211_s8, %s868_s29 }
  0x10   : > { %327 = vadd.xlane.f32.xlu0 %v326_v1  ;;  %387 = vmatpush.bf16.msra.mxu0 %v924_v15  ;;  %v957_v51 = vld [vmem:[%s310_s10] ss:$0 sm:$0xff]  ;;  %s1004_s10 = smov 64  }
  0x12   : > { %v967_v3 = vpop.eup %966 }
  0x13   : > { %v330_v4 = vmul.f32 32.0, %v967_v3  ;;  %vm334_vm1 = vweird.f32 %v967_v3 }
  0x15   : > { %v331_v5 = vsub.f32 1.0, %v330_v4 }
  0x17   : > { %v332_v6 = vmul.f32 %v967_v3, %v331_v5 }
  0x19   : > { %v333_v7 = vadd.f32 %v967_v3, %v332_v6 }
  0x1b   : > { %v1080_v8 = vsel %vm334_vm1, %v967_v3, %v333_v7 }
  0x83   : > { %v328_v9 = vpop.xlane.xlu0 %327 }
  0x84   : > { %v336_v10 = vmul.f32 %v1080_v8, %v328_v9 }
  0x86   : > { %v337_v11 = vsub.f32 %v1076_v0, %v336_v10 }
  0x88   : > { %v338_v12 = vmul.f32 %v337_v11, %v337_v11 }
  0x8a   : > { %v339_v13 = vsel %vm325_vm0, %v338_v12, 0.0 }
  0x8b   : > { %340 = vadd.xlane.f32.xlu0 %v339_v13 }
  0xfe   : > { %v341_v16 = vpop.xlane.xlu0 %340 }
  0xff   : > { %v342_v17 = vmul.f32 %v341_v16, %v1080_v8 }
 0x101   : > { %v343_v18 = vadd.f32 1e-05, %v342_v17 }
 0x103   : > { %968 = vrsqrt.f32 %v343_v18  ;;  %vm350_vm3 = vweird.f32 %v343_v18 }
 0x109   : > { %v969_v19 = vpop.eup %968 }
 0x10a   : > { %v345_v20 = vmul.f32 %v969_v19, %v343_v18  ;;  %vm351_vm2 = vweird.f32 %v969_v19 }
 0x10b   : > { %vm352_vm4 = vmor %vm350_vm3, %vm351_vm2 }
 0x10c   : > { %v346_v21 = vmul.f32 %v969_v19, %v345_v20 }
 0x10e   : > { %v347_v22 = vmul.f32 0.5, %v346_v21 }
 0x110   : > { %v348_v23 = vsub.f32 1.5, %v347_v22 }
 0x112   : > { %v349_v24 = vmul.f32 %v969_v19, %v348_v23 }
 0x114   : > { %v353_v26 = vsel %vm352_vm4, %v969_v19, %v349_v24 }
 0x115   : > { %v354_v27 = vmul.f32 %v353_v26, %v337_v11 }
 0x117   : > { %v356_v29 = vmul.f32 %v958_v25, %v354_v27 }
 0x119   : > { %v358_v30 = vadd.f32 %v959_v28, %v356_v29 }
 0x11b   : > { %v359_v31 = vpack.c.bf16 %v358_v30, %v358_v30 }
 0x11d   : > { %878 = vmatmul.msk.bf16.vlgmr.msra.gmra.mxu0 %vm325_vm0, %v359_v31 }
 0x19a   : > { %v389_v33 = vpop.f32.mrf.mxu0 }
 0x19b   : > { %v390_v34 = vadd.f32 %v960_v32, %v389_v33 }
 0x19d   : > { %v395_v35 = vpack.c.bf16 %v390_v34, %v390_v34 }
 0x19f   : > { %v397_v36 = vunpack.c.l.b16 %v395_v35 }
 0x1a1   : > { %v1102_v37 = vpack.c.b16 %v397_v36, %v397_v36 }
 0x1a2   : > { %v391_v38 = vpop.f32.mrf.mxu0 }
 0x1a3   : > { %586 = vrot.lane.b32.xlu0 %v1102_v37, %s997_s24  ;;  %460 = vrot.lane.b32.xlu2 %v1102_v37, %s998_s25 }
 0x1a4   : > { %399 = vrot.lane.b32.xlu1 %v1102_v37, %s999_s26 }
 0x1ab   : > { %588 = vrot.lane.b32.xlu2 %v1102_v37, %s1000_s30 }
 0x1ac   : > { %462 = vrot.lane.b32.xlu1 %v1102_v37, %s1001_s9 }
 0x1b3   : > { %523 = vrot.lane.b32.xlu2 %v1102_v37, %s1002_s11 }
 0x1b4   : > { %525 = vrot.lane.b32.xlu1 %v1102_v37, %s1003_s12 }
 0x1fd   : > { %v461_v39 = vpop.permute.xlu2 %460 }
 0x205   : > { %v589_v42 = vpop.permute.xlu2 %588 }
 0x206   : > { %v594_v45 = vsel %vm401_vm5, %v589_v42, 0 }
 0x20d   : > { %v524_v48 = vpop.permute.xlu2 %523 }
 0x215   : > { %v587_v49 = vpop.permute.xlu0 %586 }
 0x216   : > { %v400_v40 = vpop.permute.xlu1 %399 }
 0x217   : > { %v406_v41 = vsel %vm401_vm5, %v400_v40, 0 }
 0x218   : > { %415 = vmatpush.bf16.xpose.msra.mxu1 %v406_v41 }
 0x21e   : > { %v463_v43 = vpop.permute.xlu1 %462 }
 0x21f   : > { %879 = vmatmul.msk.bf16.vlgmr.msra.gmra.mxu1 %vm401_vm5, %v395_v35  ;;  %v468_v44 = vsel %vm401_vm5, %v463_v43, 0 }
 0x220   : > { %477 = vmatpush.bf16.xpose.msra.mxu3 %v468_v44 }
 0x226   : > { %v526_v46 = vpop.permute.xlu1 %525 }
 0x227   : > { %881 = vmatmul.msk.bf16.vlgmr.msra.gmra.mxu3 %vm401_vm5, %v461_v39  ;;  %v531_v47 = vsel %vm401_vm5, %v526_v46, 0 }
 0x228   : > { %603 = vmatpush.bf16.xpose.msrb.mxu3 %v594_v45  ;;  %540 = vmatpush.bf16.xpose.msrb.mxu0 %v531_v47 }
 0x22f   : > { %883 = vmatmul.msk.bf16.vlgmr.msrb.gmra.mxu0 %vm401_vm5, %v524_v48 }
 0x237   : > { %885 = vmatmul.msk.bf16.vlgmr.msrb.gmra.mxu3 %vm401_vm5, %v587_v49 }
 0x29c   : > { %v417_v52 = vpop.f32.mrf.mxu1 }
 0x29d   : > { %v418_v53 = vadd.f32 %v417_v52, %v393_v50 }
 0x29f   : > { %v424_v54 = vadd.f32 %v957_v51, %v418_v53 }
 0x2a1   : > { %v425_v55 = vsel %vm401_vm5, %v424_v54, -inf }
 0x2a2   : > { %426 = vmax.xlane.f32.xlu1 %v425_v55 }
 0x2a4   : > { %v419_v56 = vpop.f32.mrf.mxu1 }
 0x2aa   : > { %v479_v57 = vpop.f32.mrf.mxu3 }
 0x2ab   : > { %v480_v58 = vadd.f32 %v479_v57, %v393_v50 }
 0x2ac   : > { %v542_v59 = vpop.f32.mrf.mxu0 }
 0x2ad   : > { %v483_v60 = vadd.f32 %v957_v51, %v480_v58  ;;  %v543_v61 = vadd.f32 %v542_v59, %v393_v50 }
 0x2af   : > { %v484_v62 = vsel %vm401_vm5, %v483_v60, -inf  ;;  %v546_v1 = vadd.f32 %v957_v51, %v543_v61 }
 0x2b0   : > { %485 = vmax.xlane.f32.xlu2 %v484_v62  ;;  %v927_v62 = vld [vmem:[%s1207_s4 + $0x8] sm:$0xff] }
 0x2b1   : > { %v547_v3 = vsel %vm401_vm5, %v546_v1, -inf  ;;  %676 = vmatpush.bf16.msra.mxu0 %v927_v62 }
 0x2b2   : > { %v481_v63 = vpop.f32.mrf.mxu3 }
 0x2b3   : > { %v926_v63 = vld [vmem:[%s1207_s4] sm:$0xff] }
 0x2b4   : > { %v544_v2 = vpop.f32.mrf.mxu0 }
 0x2b5   : > { %677 = vmatpush.bf16.msra.mxu0 %v926_v63 }
 0x2b8   : > { %548 = vmax.xlane.f32.xlu2 %v547_v3 }
 0x2ba   : > { %v605_v4 = vpop.f32.mrf.mxu3 }
 0x2bb   : > { %v606_v5 = vadd.f32 %v605_v4, %v393_v50 }
 0x2bd   : > { %v609_v6 = vadd.f32 %v957_v51, %v606_v5 }
 0x2bf   : > { %v610_v7 = vsel %vm401_vm5, %v609_v6, -inf }
 0x2c0   : > { %611 = vmax.xlane.f32.xlu0 %v610_v7 }
 0x2c2   : > { %v607_v9 = vpop.f32.mrf.mxu3 }
 0x2d0   : > { %437 = vrot.lane.b32.xlu2 %v1102_v37, %s1004_s10 }
 0x2d4   : > { %496 = vrot.lane.b32.xlu0 %v1102_v37, %s1005_s17 }
 0x2d8   : > { %622 = vrot.lane.b32.xlu2 %v1102_v37, %s1006_s18 }
 0x2dc   : > { %559 = vrot.lane.b32.xlu0 %v1102_v37, %s1007_s19 }
 0x315   : > { %v427_v10 = vpop.xlane.xlu1 %426 }
 0x316   : > { %v428_v11 = vsub.f32 %v424_v54, %v427_v10 }
 0x318   : > { %v429_v12 = vmul.f32 1.442695, %v428_v11 }
 0x31a   : > { %970 = vpow2.f32 %v429_v12 }
 0x320   : > { %v971_v13 = vpop.eup %970 }
 0x321   : > { %v431_v14 = vsel %vm401_vm5, %v971_v13, 0.0 }
 0x322   : > { %432 = vadd.xlane.f32.xlu1 %v431_v14 }
 0x323   : > { %v486_v15 = vpop.xlane.xlu2 %485 }
 0x324   : > { %v487_v16 = vsub.f32 %v483_v60, %v486_v15 }
 0x326   : > { %v488_v17 = vmul.f32 1.442695, %v487_v16 }
 0x328   : > { %972 = vpow2.f32 %v488_v17 }
 0x32b   : > { %v549_v18 = vpop.xlane.xlu2 %548 }
 0x32c   : > { %v550_v25 = vsub.f32 %v546_v1, %v549_v18  ;;  %v929_v18 = vld [vmem:[%s1208_s5 + $0x8] sm:$0xff] }
 0x32e   : > { %v973_v19 = vpop.eup %972  ;;  %v551_v27 = vmul.f32 1.442695, %v550_v25 }
 0x32f   : > { %v490_v20 = vsel %vm401_vm5, %v973_v19, 0.0 }
 0x330   : > { %491 = vadd.xlane.f32.xlu1 %v490_v20 }
 0x333   : > { %v612_v21 = vpop.xlane.xlu0 %611  ;;  %v438_v22 = vpop.permute.xlu2 %437 }
 0x334   : > { %v613_v23 = vsub.f32 %v609_v6, %v612_v21  ;;  %v444_v24 = vsel %vm442_vm6, %v438_v22, 0  ;;  %v961_v6 = vld [vmem:[%s1210_s7 + $0x2] ss:$0 sm:$0xff]  ;;  %v932_v22 = vld [vmem:[%s1209_s6 + $0x10] sm:$0xff] }
 0x335   : > { %453 = vmatpush.bf16.msra.mxu2 %v444_v24  ;;  %v931_v24 = vld [vmem:[%s1209_s6 + $0x8] sm:$0xff] }
 0x336   : > { %v614_v26 = vmul.f32 1.442695, %v613_v23 }
 0x338   : > { %974 = vpow2.f32 %v614_v26 }
 0x339   : > { %976 = vpow2.f32 %v551_v27 }
 0x33b   : > { %v623_v39 = vpop.permute.xlu2 %622 }
 0x33c   : > { %v628_v41 = vsel %vm442_vm6, %v623_v39, 0 }
 0x33e   : > { %v975_v28 = vpop.eup %974 }
 0x33f   : > { %v616_v29 = vsel %vm401_vm5, %v975_v28, 0.0  ;;  %v977_v30 = vpop.eup %976 }
 0x340   : > { %617 = vadd.xlane.f32.xlu1 %v616_v29  ;;  %v553_v33 = vsel %vm401_vm5, %v977_v30, 0.0 }
 0x346   : > { %v497_v31 = vpop.permute.xlu0 %496 }
 0x347   : > { %v502_v32 = vsel %vm442_vm6, %v497_v31, 0 }
 0x348   : > { %511 = vmatpush.bf16.msrb.mxu2 %v502_v32  ;;  %554 = vadd.xlane.f32.xlu1 %v553_v33  ;;  %v963_v33 = vld [vmem:[%s1210_s7 + $0x7] ss:$0 sm:$0xff] }
 0x34e   : > { %v560_v34 = vpop.permute.xlu0 %559 }
 0x34f   : > { %v565_v35 = vsel %vm442_vm6, %v560_v34, 0 }
 0x350   : > { %574 = vmatpush.bf16.msrb.mxu1 %v565_v35 }
 0x354   : > { %739 = vmatpush.bf16.msra.mxu1 %v929_v18 }
 0x395   : > { %v433_v36 = vpop.xlane.xlu1 %432 }
 0x396   : > { %978 = vrcp.f32 %v433_v36 }
 0x39c   : > { %v979_v37 = vpop.eup %978 }
 0x39d   : > { %v435_v38 = vmul.f32 %v979_v37, %v971_v13  ;;  %v930_v37 = vld [vmem:[%s1209_s6] sm:$0xff] }
 0x39f   : > { %v436_v40 = vpack.c.bf16 %v435_v38, %v435_v38  ;;  %v964_v38 = vld [vmem:[%s1210_s7 + $0x1] ss:$0 sm:$0xff] }
 0x3a1   : > { %880 = vmatmul.msk.bf16.vlgmr.msra.gmra.mxu2 %vm401_vm5, %v436_v40 }
 0x3a2   : > { %637 = vmatpush.bf16.msra.mxu2 %v628_v41 }
 0x3a3   : > { %v492_v42 = vpop.xlane.xlu1 %491 }
 0x3a4   : > { %980 = vrcp.f32 %v492_v42 }
 0x3aa   : > { %v981_v43 = vpop.eup %980 }
 0x3ab   : > { %v494_v44 = vmul.f32 %v981_v43, %v973_v19  ;;  %v933_v19 = vld [vmem:[%s1209_s6 + $0x18] sm:$0xff] }
 0x3ac   : > { %788 = vmatpush.bf16.msra.mxu3 %v933_v19 }
 0x3ad   : > { %v495_v45 = vpack.c.bf16 %v494_v44, %v494_v44  ;;  %v965_v44 = vld [vmem:[%s1210_s7 + $0x3] ss:$0 sm:$0xff] }
 0x3b0   : > { %789 = vmatpush.bf16.msra.mxu3 %v932_v22 }
 0x3b1   : > { %882 = vmatmul.msk.bf16.vlgmr.msrb.gmra.mxu2 %vm401_vm5, %v495_v45 }
 0x3b3   : > { %v618_v46 = vpop.xlane.xlu1 %617 }
 0x3b4   : > { %982 = vrcp.f32 %v618_v46  ;;  %790 = vmatpush.bf16.msra.mxu3 %v931_v24 }
 0x3b8   : > { %791 = vmatpush.bf16.msra.mxu3 %v930_v37 }
 0x3ba   : > { %v983_v47 = vpop.eup %982 }
 0x3bb   : > { %v620_v48 = vmul.f32 %v983_v47, %v975_v28  ;;  %v555_v49 = vpop.xlane.xlu1 %554 }
 0x3bc   : > { %984 = vrcp.f32 %v555_v49 }
 0x3bd   : > { %v621_v50 = vpack.c.bf16 %v620_v48, %v620_v48 }
 0x3c1   : > { %886 = vmatmul.msk.bf16.vlgmr.msra.gmra.mxu2 %vm401_vm5, %v621_v50 }
 0x3c2   : > { %v985_v51 = vpop.eup %984 }
 0x3c3   : > { %v557_v52 = vmul.f32 %v985_v51, %v977_v30  ;;  %v962_v30 = vld [vmem:[%s1210_s7 + $0x6] ss:$0 sm:$0xff] }
 0x3c5   : > { %v558_v53 = vpack.c.bf16 %v557_v52, %v557_v52 }
 0x3c7   : > { %884 = vmatmul.msk.bf16.vlgmr.msrb.gmra.mxu1 %vm401_vm5, %v558_v53 }
 0x424   : > { %v455_v54 = vpop.f32.mrf.mxu2 }
 0x425   : > { %459 = vst.msk [vmem:[#allocation2] sm:$0xff] %vm401_vm5, %v455_v54 }
 0x42c   : > { %v457_v55 = vpop.f32.mrf.mxu2 }
 0x434   : > { %v513_v56 = vpop.f32.mrf.mxu2 }
 0x435   : > { %518 = vrot.lane.b32.xlu1 %v513_v56, %s1008_s20 }
 0x43c   : > { %v515_v57 = vpop.f32.mrf.mxu2 }
 0x444   : > { %v576_v58 = vpop.f32.mrf.mxu1  ;;  %v639_v59 = vpop.f32.mrf.mxu2 }
 0x445   : > { %644 = vrot.lane.b32.xlu0 %v639_v59, %s1009_s21  ;;  %581 = vrot.lane.b32.xlu2 %v576_v58, %s1010_s22 }
 0x44c   : > { %v578_v60 = vpop.f32.mrf.mxu1  ;;  %v641_v61 = vpop.f32.mrf.mxu2 }
 0x49f   : > { %v582_v2 = vpop.permute.xlu2 %581 }
 0x4a7   : > { %v519_v1 = vpop.permute.xlu1 %518 }
 0x4a8   : > { %522 = vst.msk [vmem:[#allocation2] sm:$0xff] %vm521_vm7, %v519_v1 }
 0x4a9   : > { %585 = vst.msk [vmem:[#allocation2] sm:$0xff] %vm584_vm8, %v582_v2 }
 0x4b7   : > { %v645_v3 = vpop.permute.xlu0 %644 }
 0x4b8   : > { %648 = vst.msk [vmem:[#allocation2] sm:$0xff] %vm647_vm9, %v645_v3 }
 0x4bf   : > { %v649_v4 = vld [vmem:[#allocation2] sm:$0xff] }
 0x4c0   : > { %v650_v5 = vpack.c.bf16 %v649_v4, %v649_v4 }
 0x4c2   : > { %895 = vmatmul.msk.bf16.vlgmr.msra.gmra.mxu0 %vm325_vm0, %v650_v5 }
 0x53f   : > { %v679_v7 = vpop.f32.mrf.mxu0 }
 0x540   : > { %v683_v9 = vadd.f32 %v679_v7, %v1076_v0  ;;  %v928_v0 = vld [vmem:[%s1208_s5] sm:$0xff] }
 0x541   : > { %740 = vmatpush.bf16.msra.mxu1 %v928_v0 }
 0x542   : > { %v685_v10 = vadd.f32 %v961_v6, %v683_v9 }
 0x544   : > { %v686_v11 = vsel %vm325_vm0, %v685_v10, 0.0 }
 0x545   : > { %687 = vadd.xlane.f32.xlu2 %v686_v11 }
 0x547   : > { %v681_v12 = vpop.f32.mrf.mxu0 }
 0x5b8   : > { %v688_v13 = vpop.xlane.xlu2 %687 }
 0x5b9   : > { %v689_v14 = vmul.f32 %v688_v13, %v1080_v8 }
 0x5bb   : > { %v690_v15 = vsub.f32 %v685_v10, %v689_v14 }
 0x5bd   : > { %v691_v16 = vmul.f32 %v690_v15, %v690_v15 }
 0x5bf   : > { %v692_v17 = vsel %vm325_vm0, %v691_v16, 0.0 }
 0x5c0   : > { %693 = vadd.xlane.f32.xlu0 %v692_v17 }
 0x633   : > { %v694_v20 = vpop.xlane.xlu0 %693 }
 0x634   : > { %v695_v21 = vmul.f32 %v694_v20, %v1080_v8 }
 0x636   : > { %v696_v23 = vadd.f32 1e-05, %v695_v21 }
 0x638   : > { %986 = vrsqrt.f32 %v696_v23  ;;  %vm703_vm11 = vweird.f32 %v696_v23 }
 0x63e   : > { %v987_v25 = vpop.eup %986 }
 0x63f   : > { %v698_v26 = vmul.f32 %v987_v25, %v696_v23  ;;  %vm704_vm10 = vweird.f32 %v987_v25 }
 0x640   : > { %vm705_vm12 = vmor %vm703_vm11, %vm704_vm10 }
 0x641   : > { %v699_v27 = vmul.f32 %v987_v25, %v698_v26 }
 0x643   : > { %v700_v28 = vmul.f32 0.5, %v699_v27 }
 0x645   : > { %v701_v29 = vsub.f32 1.5, %v700_v28 }
 0x647   : > { %v702_v8 = vmul.f32 %v987_v25, %v701_v29 }
 0x649   : > { %v706_v31 = vsel %vm705_vm12, %v987_v25, %v702_v8 }
 0x64a   : > { %v707_v32 = vmul.f32 %v706_v31, %v690_v15 }
 0x64c   : > { %v709_v34 = vmul.f32 %v962_v30, %v707_v32 }
 0x64e   : > { %v711_v35 = vadd.f32 %v963_v33, %v709_v34 }
 0x650   : > { %v712_v36 = vpack.c.bf16 %v711_v35, %v711_v35 }
 0x652   : > { %904 = vmatmul.msk.bf16.vlgmr.msra.gmra.mxu1 %vm325_vm0, %v712_v36 }
 0x6cf   : > { %v742_v39 = vpop.f32.mrf.mxu1 }
 0x6d0   : > { %v743_v40 = vadd.f32 %v964_v38, %v742_v39 }
 0x6d2   : > { %v746_v41 = vmax.f32 %v743_v40, 0.0 }
 0x6d4   : > { %v747_v42 = vpack.c.bf16 %v746_v41, %v746_v41 }
 0x6d6   : > { %921 = vmatmul.msk.bf16.vlgmr.msra.gmra.mxu3 %vm780_vm13, %v747_v42 }
 0x6d7   : > { %v744_v43 = vpop.f32.mrf.mxu1 }
 0x759   : > { %v793_v45 = vpop.f32.mrf.mxu3 }
 0x75a   : > { %v797_v46 = vadd.f32 %v793_v45, %v685_v10 }
 0x75c   : > { %v799_v47 = vadd.f32 %v965_v44, %v797_v46 }
 0x75e   : > { %800 = vst.msk [vmem:[%s314_s14] sm:$0xff] %vm325_vm0, %v799_v47 }
 0x761   : > { %v795_v48 = vpop.f32.mrf.mxu3 }
 0x762 PF: > { %s18_s27 = sadd.s32 1, %s994_s27  }
 0x763   : > { %p15_p4 = scmp.ge.s32.totalorder %s18_s27, 4  }
 0x765   :  { %17 = sbr.rel (!%p15_p4) target bundleno = 1 (0x1), region = 85 }

</bundles_post_ra>
